<compile_context>
chip_gen: v7x
topology: tpu7x:2x2x1
jax: 0.10.0
libtpu: 0.0.40
codegen_flags: <defaults>
</compile_context>

<pallas_src>
import functools

import jax
import jax.numpy as jnp
from jax.experimental import pallas as pl
from jax.experimental.pallas import tpu as pltpu


def _cdiv(a, b):
    return -(-a // b)


def _round_up(a, b):
    return _cdiv(a, b) * b


def _projection_kernel(x_ref, w_ref, o_ref):
    """One (tm, D_out) output slab; full-K contraction in a single MXU call.

    x_ref: (tm, D_in)     current row tile (source dtype)
    w_ref: (D_in, D_out)  whole weight, VMEM-resident (constant index_map)
    o_ref: (tm, D_out)
    """
    x = x_ref[...]
    w = w_ref[...]
    if x.dtype != w.dtype:
        # In-kernel cast: HBM traffic for x stays at the source dtype while
        # the MXU runs at the (bf16) compute dtype.
        x = x.astype(w.dtype)
    o_ref[...] = jnp.dot(
        x, w, preferred_element_type=jnp.float32
    ).astype(o_ref.dtype)


@functools.partial(jax.jit, static_argnames=("tm", "vmem_limit_bytes"))
def _projection_pallas(x2d, w_kn, *, tm, vmem_limit_bytes):
    M, K = x2d.shape
    K_w, N = w_kn.shape
    assert K == K_w
    x_bytes = jnp.dtype(x2d.dtype).itemsize
    w_bytes = jnp.dtype(w_kn.dtype).itemsize
    return pl.pallas_call(
        _projection_kernel,
        out_shape=jax.ShapeDtypeStruct((M, N), x2d.dtype),
        grid_spec=pltpu.PrefetchScalarGridSpec(
            num_scalar_prefetch=0,
            # Ragged last block: OOB loads are row-independent garbage, OOB
            # stores are masked.  NOTE: this relies on each output row only
            # depending on its own input row (no bias/reduction over rows).
            grid=(_cdiv(M, tm),),
            in_specs=[
                # Row tile streams with the grid.
                pl.BlockSpec((tm, K), lambda i: (i, 0)),
                # Constant index_map -> whole weight loaded once, kept in VMEM.
                pl.BlockSpec((K, N), lambda i: (0, 0)),
            ],
            out_specs=pl.BlockSpec((tm, N), lambda i: (i, 0)),
        ),
        compiler_params=pltpu.CompilerParams(
            # Only buys anything on 2-TC parts (v7x); harmless elsewhere.
            dimension_semantics=("parallel",),
            vmem_limit_bytes=int(vmem_limit_bytes),
        ),
        cost_estimate=pl.CostEstimate(
            flops=2 * M * K * N,
            transcendentals=0,
            bytes_accessed=M * K * x_bytes + K * N * w_bytes + M * N * x_bytes,
        ),
    )(x2d, w_kn)


def _device_kind():
    try:
        return jax.devices()[0].device_kind.lower()
    except Exception:  # pragma: no cover - conservative fallback
        return ""


def _plan_tiles(M, K, N, x_itemsize, w_itemsize, tm_override=None):
    """Pick (tm, vmem_limit_bytes) from VMEM/DMA considerations, not MXU shape."""
    kind = _device_kind()
    is_v7x = "v7" in kind
    # Sublane granularity by element size (f32: 8, bf16: 16, int8/fp8: 32).
    sub = {4: 8, 2: 16, 1: 32}.get(x_itemsize, 8)

    # Tile budget: v7x is a 64 MiB VMEM part (32 MiB default scoped); v5e/v6e
    # have 128 MiB physical (v5e's 16 MiB scoped default is overridden below).
    budget = (36 << 20) if is_v7x else (64 << 20)
    w_resident = 2 * K * N * w_itemsize          # weight (default double-buffer)
    per_row = 2 * (K + N) * x_itemsize           # x & out tiles, double-buffered

    if tm_override is not None:
        tm = max(sub, _round_up(int(tm_override), sub))
    else:
        tm = max(sub, (budget - w_resident) // per_row)
        cap = 1024 if x_itemsize >= 4 else 2048  # f32 vs bf16/packed caps
        tm = min(tm, cap, _round_up(M, sub))
        if is_v7x and M > sub:
            # Keep >= 2 grid steps so both TensorCores get work.
            tm = min(tm, _round_up(_cdiv(M, 2), sub))
        tm = max(sub, (tm // sub) * sub)

    needed = w_resident + tm * per_row + (4 << 20)  # + headroom
    phys_cap = (48 << 20) if is_v7x else (100 << 20)
    vmem_limit = max(32 << 20, min(needed, phys_cap))
    return tm, vmem_limit


def prepare_projection_weight(weight, compute_dtype=jnp.bfloat16):
    """One-time (model-load) prep of the PyTorch nn.Linear weight.

    weight: (D_out, D_in) PyTorch layout -> returns (D_in, D_out) in
    `compute_dtype`.  Transposing once gives the MXU a canonical (K, N) feed
    (no per-step relayout of the resident tile); bf16 is MXU-native and
    halves the weight's HBM/VMEM bytes.  Pass compute_dtype=jnp.float32 if
    exact f32 numerics are required.
    """
    return jnp.asarray(weight).T.astype(compute_dtype)


def text_projection_forward(x, w_kn, *, tm=None):
    """x: (B, L, D_in); w_kn: (D_in, D_out) from prepare_projection_weight().

    Returns (B, L, D_out) in x.dtype, matching nn.Linear(D_in, D_out,
    bias=False)(x) (f32 accumulation always; numerics depend on w_kn dtype).
    """
    B, L, D_in = x.shape
    K, N = w_kn.shape
    assert K == D_in, "weight in_features must match x's last dim"
    M = B * L
    tm_sel, vmem_limit = _plan_tiles(
        M, K, N,
        jnp.dtype(x.dtype).itemsize,
        jnp.dtype(w_kn.dtype).itemsize,
        tm_override=tm,
    )
    out2d = _projection_pallas(
        x.reshape(M, D_in), w_kn, tm=tm_sel, vmem_limit_bytes=vmem_limit
    )
    return out2d.reshape(B, L, N)


if __name__ == "__main__":
    # Small stand-in for CLIP ViT-L/14 visual_projection (real: 1024 -> 768,
    # no bias).  Deterministic synthetic weight, not a checkpoint load.
    B, L = 2, 8
    D_IN, D_OUT = 256, 128

    key = jax.random.PRNGKey(0)
    kx, kw, kx2 = jax.random.split(key, 3)
    x = jax.random.normal(kx, (B, L, D_IN), dtype=jnp.float32)
    bound = 1.0 / (D_IN ** 0.5)
    weight = jax.random.uniform(
        kw, (D_OUT, D_IN), dtype=jnp.float32, minval=-bound, maxval=bound
    )
    ref = jnp.einsum("bld,od->blo", x, weight)

    # 1) Default path: bf16 weight / compute, f32 accumulate, f32 output.
    w_bf16 = prepare_projection_weight(weight, jnp.bfloat16)
    out_bf16 = jax.block_until_ready(text_projection_forward(x, w_bf16))
    assert out_bf16.shape == (B, L, D_OUT)
    assert out_bf16.dtype == x.dtype
    assert jnp.allclose(out_bf16, ref, atol=5e-2, rtol=5e-2)

    # 2) f32 fallback path, forced small tm so the grid has several steps and
    #    a ragged (non-tile-aligned) last block gets exercised.
    B2, L2 = 3, 7  # M = 21, not a multiple of tm
    x2 = jax.random.normal(kx2, (B2, L2, D_IN), dtype=jnp.float32)
    w_f32 = prepare_projection_weight(weight, jnp.float32)
    out_f32 = jax.block_until_ready(text_projection_forward(x2, w_f32, tm=8))
    ref2 = jnp.einsum("bld,od->blo", x2, weight)
    assert out_f32.shape == (B2, L2, D_OUT)
    assert jnp.allclose(out_f32, ref2, atol=1e-4, rtol=1e-4)

    print("KERNEL_OK")
</pallas_src>

<mosaic_0001>
module attributes {stable_mosaic.version = 11 : i64} {
  func.func @_projection_kernel(%arg0: i32, %arg1: memref<16x256xf32, #tpu.memory_space<vmem>>, %arg2: memref<256x128xbf16, #tpu.memory_space<vmem>>, %arg3: memref<16x128xf32, #tpu.memory_space<vmem>>) attributes {dimension_semantics = [#tpu.dimension_semantics<parallel>], iteration_bounds = array<i64: 1>, scalar_prefetch = 0 : i64, scratch_operands = 0 : i64, tpu.core_type = #tpu.core_type<tc>, window_params = [{transform_indices = @transform_0, window_bounds = array<i64: 16, 256>}, {pipeline_mode = #tpu.pipeline_mode<synchronous>, transform_indices = @transform_1, window_bounds = array<i64: 256, 128>}, {transform_indices = @transform_2, window_bounds = array<i64: 16, 128>}]} {
    %c0 = arith.constant 0 : index
    %c0_0 = arith.constant 0 : index
    %0 = vector.load %arg1[%c0, %c0_0] : memref<16x256xf32, #tpu.memory_space<vmem>>, vector<16x256xf32>
    %c0_1 = arith.constant 0 : index
    %c0_2 = arith.constant 0 : index
    %1 = vector.load %arg2[%c0_1, %c0_2] : memref<256x128xbf16, #tpu.memory_space<vmem>>, vector<256x128xbf16>
    %2 = arith.truncf %0 : vector<16x256xf32> to vector<16x256xbf16>
    %cst = arith.constant dense<0.000000e+00> : vector<16x128xf32>
    %3 = tpu.matmul %2, %1, %cst {dimension_numbers = #tpu.dot_dimension_numbers<[1], [0], [0], [1], [0, 0, 1, 1], [], []>} : vector<16x256xbf16>, vector<256x128xbf16>, vector<16x128xf32> -> vector<16x128xf32>
    %c0_3 = arith.constant 0 : index
    %c0_4 = arith.constant 0 : index
    %4 = vector.load %arg3[%c0_3, %c0_4] : memref<16x128xf32, #tpu.memory_space<vmem>>, vector<16x128xf32>
    tpu.vector_store %arg3[%c0_3, %c0_4], %3 {strides = array<i32>} : memref<16x128xf32, #tpu.memory_space<vmem>>, vector<16x128xf32>,
    return
  }
  func.func @transform_0(%arg0: i32) -> (i32, i32) {
    %c0_i32 = arith.constant 0 : i32
    %c0_i32_0 = arith.constant 0 : i32
    return %arg0, %c0_i32 : i32, i32
  }
  func.func @transform_1(%arg0: i32) -> (i32, i32) {
    %c0_i32 = arith.constant 0 : i32
    %c0_i32_0 = arith.constant 0 : i32
    %c0_i32_1 = arith.constant 0 : i32
    return %c0_i32, %c0_i32_0 : i32, i32
  }
  func.func @transform_2(%arg0: i32) -> (i32, i32) {
    %c0_i32 = arith.constant 0 : i32
    %c0_i32_0 = arith.constant 0 : i32
    return %arg0, %c0_i32 : i32, i32
  }
}

</mosaic_0001>

<bundles_post_ra>
// kernel: _projection_pallas.1
= control target key start
LH: loop header
LB: loop body
LE: loop exit
PB: predicated region body
PF: predicated region fallthrough
CT: control target
= control target key end

     0   :  { %7 = vsyncpa [#allocation3], 0  ;;  %s431_s0 = inlined_call_operand.hbm [shape: f32[16,256], index: 0, kind: input, shape index: {}]   ;;  %s432_s1 = inlined_call_operand.hbm [shape: bf16[256,128], index: 1, kind: input, shape index: {}]   ;;  %s433_s2 = inlined_call_operand.hbm [shape: f32[16,128], index: 2, kind: output, shape index: {}]  }
   0x1   :  { %8 = vsyncpa [#allocation6], 0 }
   0x2   :  { %9 = vsyncpa [#allocation4], 0  ;;  %s371_s9 = smov [#allocation2]   ;;  %s299_s13 = scalar_lea.hbm %s431_s0, 512 }
   0x3   :  { %s15_s10 = sshll.u32 %s371_s9, 4  ;;  %p300_p0 = scmp.ne.s32.totalorder %s431_s0, %s299_s13  ;;  %s16_s10 = int_to_ptr.vmem [resolvable:$true] %s15_s10 }
   0x4   :  { %p303_p1 = scmp.lt.u32.totalorder %s299_s13, %s431_s0 }
   0x6   :  { %p305_p2 = pnand %p303_p1, %p300_p0 }
   0x8   :  { %308 = shalt.err (!%p305_p2)
}
   0x9   :  { %s309_s18 = scalar_lea.vmem %s16_s10, 512  ;;  %p314_p4 = scmp.lt.s32.totalorder %s16_s10, %s16_s10 }
   0xa   :  { %p310_p3 = scmp.ne.s32.totalorder %s16_s10, %s309_s18  ;;  %p315_p5 = scmp.lt.s32.totalorder %s309_s18, %s309_s18 }
   0xc   :  { %p316_p6 = por %p315_p5, %p314_p4 }
   0xe   :  { %p317_p7 = pnand %p316_p6, %p310_p3 }
  0x10   :  { %320 = shalt.err (!%p317_p7)
}
  0x11   :  { %s372_s19 = smov 256   ;;  %s373_s20 = smov 16  }
  0x12   :  { %21 = dma.hbm_to_vmem [thread:$0]  %s431_s0, 512, %s16_s10, [#allocation3], %s372_s19, %s372_s19, %s373_s20  }
  0x13   :  { %s374_s23 = smov [#allocation5]   ;;  %s321_s27 = scalar_lea.hbm %s432_s1, 2048 }
  0x14   :  { %s27_s24 = sshll.u32 %s374_s23, 4  ;;  %p322_p8 = scmp.ne.s32.totalorder %s432_s1, %s321_s27  ;;  %s28_s24 = int_to_ptr.vmem [resolvable:$true] %s27_s24 }
  0x15   :  { %p325_p9 = scmp.lt.u32.totalorder %s321_s27, %s432_s1 }
  0x17   :  { %p327_p10 = pnand %p325_p9, %p322_p8 }
  0x19   :  { %330 = shalt.err (!%p327_p10)
}
  0x1a   :  { %s331_s4 = scalar_lea.vmem %s28_s24, 2048  ;;  %p336_p12 = scmp.lt.s32.totalorder %s28_s24, %s28_s24 }
  0x1b   :  { %p332_p11 = scmp.ne.s32.totalorder %s28_s24, %s331_s4  ;;  %p337_p13 = scmp.lt.s32.totalorder %s331_s4, %s331_s4 }
  0x1d   :  { %p338_p0 = por %p337_p13, %p336_p12 }
  0x1f   :  { %p339_p1 = pnand %p338_p0, %p332_p11 }
  0x21   :  { %342 = shalt.err (!%p339_p1)
}
  0x22   :  { %s375_s0 = smov 64   ;;  %s376_s5 = smov 4  }
  0x23   :  { %33 = dma.hbm_to_vmem [thread:$0]  %s432_s1, 2048, %s28_s24, [#allocation6], %s375_s0, %s375_s0, %s376_s5  }
  0x24   :  { %365 = dma.done.wait [#allocation3], 512  }
  0x25   :  { %366 = vsyncadd [#allocation3], 4294966784 }
  0x26   :  { %367 = dma.done.wait [#allocation6], 2048  }
  0x27   :  { %368 = vsyncadd [#allocation6], 4294965248  ;;  %v283_v0 = vld [vmem:[#allocation5 + $0x40] sm:$0xff]   ;;  %v285_v2 = vld [vmem:[#allocation5 + $0x48] sm:$0xff]   ;;  %s377_s1 = smov [#allocation7]  }
  0x28   :  { %v284_v1 = vld [vmem:[#allocation5] sm:$0xff]   ;;  %252 = vmatprep.subr.bf16.mxu0 %v283_v0  ;;  %v286_v3 = vld [vmem:[#allocation5 + $0x8] sm:$0xff]   ;;  %v287_v4 = vld [vmem:[#allocation5 + $0x50] sm:$0xff]   ;;  %s223_s8 = sshll.u32 %s377_s1, 4  ;;  %s224_s8 = int_to_ptr.vmem [resolvable:$true] %s223_s8 }
  0x29   :  { %253 = vmatpush3.bf16.msra.mxu0 %v284_v1  ;;  %v288_v5 = vld [vmem:[#allocation5 + $0x10] sm:$0xff]   ;;  %v289_v6 = vld [vmem:[#allocation5 + $0x58] sm:$0xff]   ;;  %v291_v8 = vld [vmem:[#allocation5 + $0x60] sm:$0xff]   ;;  %s343_s9 = scalar_lea.vmem %s224_s8, 256  ;;  %p348_p3 = scmp.lt.s32.totalorder %s224_s8, %s224_s8 }
  0x2a   :  { %254 = vmatprep.subr.bf16.mxu0 %v285_v2  ;;  %v290_v7 = vld [vmem:[#allocation5 + $0x18] sm:$0xff]   ;;  %v292_v9 = vld [vmem:[#allocation5 + $0x20] sm:$0xff]   ;;  %v293_v10 = vld [vmem:[#allocation5 + $0x68] sm:$0xff]   ;;  %p344_p2 = scmp.ne.s32.totalorder %s224_s8, %s343_s9  ;;  %p349_p4 = scmp.lt.s32.totalorder %s343_s9, %s343_s9 }
  0x2b   :  { %v42_v11 = vld [vmem:[#allocation2 + $0x8] sm:$0xff]  ;;  %v44_v12 = vld [vmem:[#allocation2 + $0x18] sm:$0xff]  ;;  %v295_v15 = vld [vmem:[#allocation5 + $0x70] sm:$0xff]  }
  0x2c   :  { %v78_v13 = vpack.c.bf16 %v44_v12, %v42_v11  ;;  %v294_v14 = vld [vmem:[#allocation5 + $0x28] sm:$0xff]   ;;  %v296_v16 = vld [vmem:[#allocation5 + $0x30] sm:$0xff]   ;;  %v297_v17 = vld [vmem:[#allocation5 + $0x78] sm:$0xff]   ;;  %p350_p5 = por %p349_p4, %p348_p3 }
  0x2d   :  { %255 = vmatpush3.bf16.msra.mxu0 %v286_v3  ;;  %v298_v18 = vld [vmem:[#allocation5 + $0x38] sm:$0xff]   ;;  %v41_v19 = vld [vmem:[#allocation2] sm:$0xff]  ;;  %v43_v20 = vld [vmem:[#allocation2 + $0x10] sm:$0xff] }
  0x2e   :  { %256 = vmatprep.subr.bf16.mxu0 %v287_v4  ;;  %207 = vmatprep.mubr.bf16.mxu0 %v78_v13  ;;  %v77_v21 = vpack.c.bf16 %v43_v20, %v41_v19  ;;  %p351_p6 = pnand %p350_p5, %p344_p2 }
  0x31   :  { %257 = vmatpush3.bf16.msra.mxu0 %v288_v5 }
  0x32   :  { %258 = vmatprep.subr.bf16.mxu0 %v289_v6 }
  0x35   :  { %259 = vmatpush3.bf16.msra.mxu0 %v290_v7 }
  0x36   :  { %260 = vmatprep.subr.bf16.mxu0 %v291_v8 }
  0x39   :  { %261 = vmatpush3.bf16.msra.mxu0 %v292_v9 }
  0x3a   :  { %262 = vmatprep.subr.bf16.mxu0 %v293_v10 }
  0x3d   :  { %263 = vmatpush3.bf16.msra.mxu0 %v294_v14 }
  0x3e   :  { %264 = vmatprep.subr.bf16.mxu0 %v295_v15 }
  0x41   :  { %265 = vmatpush3.bf16.msra.mxu0 %v296_v16 }
  0x42   :  { %266 = vmatprep.subr.bf16.mxu0 %v297_v17 }
  0x45   :  { %267 = vmatpush3.bf16.msra.mxu0 %v298_v18 }
  0x48   :  { %208 = vmatmul.mubr.bf16.vlgmr.msra.gmra.mrb[0].mxu0 %v77_v21 }
 0x11b   :  { %v268_v22 = vpop.f32.mrb[0].mxu0 }
 0x11c   :  { %v269_v23 = vpop.f32.mrb[1].mxu0 }
 0x11d   :  { %v270_v24 = vadd.f32 %v269_v23, %v268_v22  ;;  %v271_v25 = vpop.f32.mrb[2].mxu0 }
 0x11e   :  { %v272_v26 = vpop.f32.mrb[3].mxu0 }
 0x11f   :  { %216 = vst [vmem:[#allocation7] sm:$0xff] %v270_v24  ;;  %v273_v27 = vadd.f32 %v272_v26, %v271_v25 }
 0x121   :  { %217 = vst [vmem:[#allocation7 + $0x8] sm:$0xff] %v273_v27 }
 0x122   :  { %354 = shalt.err (!%p351_p6)
}
 0x123   :  { %s355_s12 = scalar_lea.hbm %s433_s2, 256 }
 0x124   :  { %p356_p7 = scmp.ne.s32.totalorder %s433_s2, %s355_s12  ;;  %p359_p8 = scmp.lt.u32.totalorder %s355_s12, %s433_s2 }
 0x126   :  { %p361_p9 = pnand %p359_p8, %p356_p7 }
 0x128   :  { %364 = shalt.err (!%p361_p9)
}
 0x129   :  { %s378_s17 = smov 128   ;;  %s379_s18 = smov 8  }
 0x12a   :  { %229 = dma.vmem_to_hbm [thread:$0]  %s224_s8, 256, %s433_s2, [#allocation4], %s378_s17, %s378_s17, %s379_s18  }
 0x12b   :  { %369 = dma.done.wait [#allocation4], 256  }
 0x12c   :  { %370 = vsyncadd [#allocation4], 4294967040 }
 0x12d   :  { %233 = vsyncpa [#allocation3], 1 }
 0x12e   :  { %234 = vsyncpa [#allocation6], 1 }
 0x12f   :  { %235 = vsyncpa [#allocation4], 1 }

</bundles_post_ra>
